<compile_context>
chip_gen: v7x
topology: tpu7x:2x2x1
jax: 0.10.0
libtpu: 0.0.40
codegen_flags: <defaults>
</compile_context>

<pallas_src>
import jax
import jax.numpy as jnp
from jax.experimental import pallas as pl
from jax.experimental.pallas import tpu as pltpu

INPUT_SIZE = 5           # ['Temperature','Humidity','Light','CO2','HumidityRatio']
HIDDEN_SIZE = 10
LAYER2_HIDDEN_SIZE = 10
OUTPUT_SIZE = 1

DEFAULT_TILE_B = 1024    # lane-axis tile (multiple of 128)


def _mlp_kernel(x_ref, w1_ref, b1_ref, w2_ref, b2_ref, w3_ref, b3_ref, o_ref):
    # x_ref: (INPUT_SIZE, TB)  -- batch on lanes, features on sublanes.
    x = x_ref[...]

    # fc1 + ReLU: (10,5) @ (5,TB) -> (10,TB)
    h1 = jnp.dot(w1_ref[...], x, preferred_element_type=jnp.float32) + b1_ref[...]
    h1 = jnp.maximum(h1, 0.0)

    # fc2 + ReLU: (10,10) @ (10,TB) -> (10,TB)
    h2 = jnp.dot(w2_ref[...], h1, preferred_element_type=jnp.float32) + b2_ref[...]
    h2 = jnp.maximum(h2, 0.0)

    # fc3: (1,10) @ (10,TB) -> (1,TB)
    z = jnp.dot(w3_ref[...], h2, preferred_element_type=jnp.float32) + b3_ref[...]

    # Sigmoid as a single EUP op: sigmoid(z) = 0.5 * (1 + tanh(z/2)).
    o_ref[...] = 0.5 * (1.0 + jnp.tanh(0.5 * z))


def occupancy_detection_net(x, params, tile_b=DEFAULT_TILE_B):
    """Forward pass. x: (B, INPUT_SIZE) float32. Returns (B, OUTPUT_SIZE)."""
    assert tile_b % 128 == 0, "tile_b must be a multiple of 128 (lane width)"
    w1, b1, w2, b2, w3, b3 = params        # w: (out, in), b: (out, 1)
    B = x.shape[0]

    # Transpose so batch is the lane axis, pad the (ragged) batch to a
    # multiple of the tile size in the wrapper; padded columns are sliced off.
    xt = x.T                                              # (F, B)
    num_tiles = pl.cdiv(B, tile_b)
    Bp = num_tiles * tile_b
    if Bp != B:
        xt = jnp.pad(xt, ((0, 0), (0, Bp - B)))

    const_spec = lambda shape: pl.BlockSpec(shape, lambda i: (0, 0))

    out_t = pl.pallas_call(
        _mlp_kernel,
        out_shape=jax.ShapeDtypeStruct((OUTPUT_SIZE, Bp), jnp.float32),
        grid=(num_tiles,),
        in_specs=[
            pl.BlockSpec((INPUT_SIZE, tile_b), lambda i: (0, i)),
            const_spec(w1.shape), const_spec(b1.shape),
            const_spec(w2.shape), const_spec(b2.shape),
            const_spec(w3.shape), const_spec(b3.shape),
        ],
        out_specs=pl.BlockSpec((OUTPUT_SIZE, tile_b), lambda i: (0, i)),
        compiler_params=pltpu.CompilerParams(
            dimension_semantics=("parallel",)),   # shards batch tiles on v7x's 2 TCs
    )(xt, w1, b1, w2, b2, w3, b3)

    return out_t[:, :B].T                                 # (B, OUTPUT_SIZE)


def init_params(key):
    """Deterministic parameter init matching nn.Linear shapes.

    Weights kept in PyTorch's (out_features, in_features) orientation; biases
    reshaped to (out_features, 1) column vectors for the transposed layout.
    """
    keys = jax.random.split(key, 6)

    def linear(kw, kb, fan_in, fan_out):
        bound = 1.0 / jnp.sqrt(fan_in)
        w = jax.random.uniform(kw, (fan_out, fan_in), jnp.float32, -bound, bound)
        b = jax.random.uniform(kb, (fan_out,), jnp.float32, -bound, bound)
        return w, b.reshape(fan_out, 1)

    w1, b1 = linear(keys[0], keys[1], INPUT_SIZE, HIDDEN_SIZE)
    w2, b2 = linear(keys[2], keys[3], HIDDEN_SIZE, LAYER2_HIDDEN_SIZE)
    w3, b3 = linear(keys[4], keys[5], LAYER2_HIDDEN_SIZE, OUTPUT_SIZE)
    return (w1, b1, w2, b2, w3, b3)


def reference_forward(x, params):
    """Pure-JAX reference for correctness check (PyTorch semantics)."""
    w1, b1, w2, b2, w3, b3 = params
    h = jnp.maximum(x @ w1.T + b1.T, 0.0)
    h = jnp.maximum(h @ w2.T + b2.T, 0.0)
    return jax.nn.sigmoid(h @ w3.T + b3.T)


if __name__ == "__main__":
    key = jax.random.PRNGKey(0)
    k_x, k_p = jax.random.split(key)

    batch = 8
    x = jax.random.normal(k_x, (batch, INPUT_SIZE), dtype=jnp.float32)
    params = init_params(k_p)

    out = occupancy_detection_net(x, params)
    out = jax.block_until_ready(out)

    ref = reference_forward(x, params)
    assert out.shape == (batch, OUTPUT_SIZE)
    assert jnp.allclose(out, ref, atol=5e-4, rtol=5e-4), (out, ref)

    print("KERNEL_OK")
</pallas_src>

<mosaic_0001>
module attributes {stable_mosaic.version = 11 : i64} {
  func.func @_mlp_kernel(%arg0: i32, %arg1: memref<5x1024xf32, #tpu.memory_space<vmem>>, %arg2: memref<10x5xf32, #tpu.memory_space<vmem>>, %arg3: memref<10x1xf32, #tpu.memory_space<vmem>>, %arg4: memref<10x10xf32, #tpu.memory_space<vmem>>, %arg5: memref<10x1xf32, #tpu.memory_space<vmem>>, %arg6: memref<1x10xf32, #tpu.memory_space<vmem>>, %arg7: memref<1x1xf32, #tpu.memory_space<vmem>>, %arg8: memref<1x1024xf32, #tpu.memory_space<vmem>>) attributes {dimension_semantics = [#tpu.dimension_semantics<parallel>], iteration_bounds = array<i64: 1>, scalar_prefetch = 0 : i64, scratch_operands = 0 : i64, tpu.core_type = #tpu.core_type<tc>, window_params = [{transform_indices = @transform_0, window_bounds = array<i64: 5, 1024>}, {pipeline_mode = #tpu.pipeline_mode<synchronous>, transform_indices = @transform_1, window_bounds = array<i64: 10, 5>}, {pipeline_mode = #tpu.pipeline_mode<synchronous>, transform_indices = @transform_2, window_bounds = array<i64: 10, 1>}, {pipeline_mode = #tpu.pipeline_mode<synchronous>, transform_indices = @transform_3, window_bounds = array<i64: 10, 10>}, {pipeline_mode = #tpu.pipeline_mode<synchronous>, transform_indices = @transform_4, window_bounds = array<i64: 10, 1>}, {pipeline_mode = #tpu.pipeline_mode<synchronous>, transform_indices = @transform_5, window_bounds = array<i64: 1, 10>}, {pipeline_mode = #tpu.pipeline_mode<synchronous>, transform_indices = @transform_6, window_bounds = array<i64: 1, 1>}, {transform_indices = @transform_7, window_bounds = array<i64: 1, 1024>}]} {
    %c0 = arith.constant 0 : index
    %c0_0 = arith.constant 0 : index
    %0 = vector.load %arg1[%c0, %c0_0] : memref<5x1024xf32, #tpu.memory_space<vmem>>, vector<5x1024xf32>
    %c0_1 = arith.constant 0 : index
    %c0_2 = arith.constant 0 : index
    %1 = vector.load %arg2[%c0_1, %c0_2] : memref<10x5xf32, #tpu.memory_space<vmem>>, vector<10x5xf32>
    %cst = arith.constant dense<0.000000e+00> : vector<10x1024xf32>
    %2 = tpu.matmul %1, %0, %cst {dimension_numbers = #tpu.dot_dimension_numbers<[1], [0], [0], [1], [0, 0, 1, 1], [], []>} : vector<10x5xf32>, vector<5x1024xf32>, vector<10x1024xf32> -> vector<10x1024xf32>
    %c0_3 = arith.constant 0 : index
    %c0_4 = arith.constant 0 : index
    %3 = vector.load %arg3[%c0_3, %c0_4] : memref<10x1xf32, #tpu.memory_space<vmem>>, vector<10x1xf32>
    %4 = vector.broadcast %3 : vector<10x1xf32> to vector<10x1024xf32>
    %5 = arith.addf %2, %4 : vector<10x1024xf32>
    %cst_5 = arith.constant 0.000000e+00 : f32
    %6 = vector.broadcast %cst_5 : f32 to vector<10x1024xf32>
    %7 = arith.maximumf %5, %6 : vector<10x1024xf32>
    %c0_6 = arith.constant 0 : index
    %c0_7 = arith.constant 0 : index
    %8 = vector.load %arg4[%c0_6, %c0_7] : memref<10x10xf32, #tpu.memory_space<vmem>>, vector<10x10xf32>
    %cst_8 = arith.constant dense<0.000000e+00> : vector<10x1024xf32>
    %9 = tpu.matmul %8, %7, %cst_8 {dimension_numbers = #tpu.dot_dimension_numbers<[1], [0], [0], [1], [0, 0, 1, 1], [], []>} : vector<10x10xf32>, vector<10x1024xf32>, vector<10x1024xf32> -> vector<10x1024xf32>
    %c0_9 = arith.constant 0 : index
    %c0_10 = arith.constant 0 : index
    %10 = vector.load %arg5[%c0_9, %c0_10] : memref<10x1xf32, #tpu.memory_space<vmem>>, vector<10x1xf32>
    %11 = vector.broadcast %10 : vector<10x1xf32> to vector<10x1024xf32>
    %12 = arith.addf %9, %11 : vector<10x1024xf32>
    %cst_11 = arith.constant 0.000000e+00 : f32
    %13 = vector.broadcast %cst_11 : f32 to vector<10x1024xf32>
    %14 = arith.maximumf %12, %13 : vector<10x1024xf32>
    %c0_12 = arith.constant 0 : index
    %c0_13 = arith.constant 0 : index
    %15 = vector.load %arg6[%c0_12, %c0_13] : memref<1x10xf32, #tpu.memory_space<vmem>>, vector<1x10xf32>
    %cst_14 = arith.constant dense<0.000000e+00> : vector<1x1024xf32>
    %16 = tpu.matmul %15, %14, %cst_14 {dimension_numbers = #tpu.dot_dimension_numbers<[1], [0], [0], [1], [0, 0, 1, 1], [], []>} : vector<1x10xf32>, vector<10x1024xf32>, vector<1x1024xf32> -> vector<1x1024xf32>
    %c0_15 = arith.constant 0 : index
    %c0_16 = arith.constant 0 : index
    %17 = vector.load %arg7[%c0_15, %c0_16] : memref<1x1xf32, #tpu.memory_space<vmem>>, vector<1x1xf32>
    %18 = vector.broadcast %17 : vector<1x1xf32> to vector<1x1024xf32>
    %19 = arith.addf %16, %18 : vector<1x1024xf32>
    %cst_17 = arith.constant 5.000000e-01 : f32
    %20 = vector.broadcast %cst_17 : f32 to vector<1x1024xf32>
    %21 = arith.mulf %20, %19 : vector<1x1024xf32>
    %22 = math.tanh %21 : vector<1x1024xf32>
    %cst_18 = arith.constant 1.000000e+00 : f32
    %23 = vector.broadcast %cst_18 : f32 to vector<1x1024xf32>
    %24 = arith.addf %23, %22 : vector<1x1024xf32>
    %cst_19 = arith.constant 5.000000e-01 : f32
    %25 = vector.broadcast %cst_19 : f32 to vector<1x1024xf32>
    %26 = arith.mulf %25, %24 : vector<1x1024xf32>
    %c0_20 = arith.constant 0 : index
    %c0_21 = arith.constant 0 : index
    %27 = vector.load %arg8[%c0_20, %c0_21] : memref<1x1024xf32, #tpu.memory_space<vmem>>, vector<1x1024xf32>
    tpu.vector_store %arg8[%c0_20, %c0_21], %26 {strides = array<i32>} : memref<1x1024xf32, #tpu.memory_space<vmem>>, vector<1x1024xf32>,
    return
  }
  func.func @transform_0(%arg0: i32) -> (i32, i32) {
    %c0_i32 = arith.constant 0 : i32
    %c0_i32_0 = arith.constant 0 : i32
    return %c0_i32, %arg0 : i32, i32
  }
  func.func @transform_1(%arg0: i32) -> (i32, i32) {
    %c0_i32 = arith.constant 0 : i32
    %c0_i32_0 = arith.constant 0 : i32
    %c0_i32_1 = arith.constant 0 : i32
    return %c0_i32, %c0_i32_0 : i32, i32
  }
  func.func @transform_2(%arg0: i32) -> (i32, i32) {
    %c0_i32 = arith.constant 0 : i32
    %c0_i32_0 = arith.constant 0 : i32
    %c0_i32_1 = arith.constant 0 : i32
    return %c0_i32, %c0_i32_0 : i32, i32
  }
  func.func @transform_3(%arg0: i32) -> (i32, i32) {
    %c0_i32 = arith.constant 0 : i32
    %c0_i32_0 = arith.constant 0 : i32
    %c0_i32_1 = arith.constant 0 : i32
    return %c0_i32, %c0_i32_0 : i32, i32
  }
  func.func @transform_4(%arg0: i32) -> (i32, i32) {
    %c0_i32 = arith.constant 0 : i32
    %c0_i32_0 = arith.constant 0 : i32
    %c0_i32_1 = arith.constant 0 : i32
    return %c0_i32, %c0_i32_0 : i32, i32
  }
  func.func @transform_5(%arg0: i32) -> (i32, i32) {
    %c0_i32 = arith.constant 0 : i32
    %c0_i32_0 = arith.constant 0 : i32
    %c0_i32_1 = arith.constant 0 : i32
    return %c0_i32, %c0_i32_0 : i32, i32
  }
  func.func @transform_6(%arg0: i32) -> (i32, i32) {
    %c0_i32 = arith.constant 0 : i32
    %c0_i32_0 = arith.constant 0 : i32
    %c0_i32_1 = arith.constant 0 : i32
    return %c0_i32, %c0_i32_0 : i32, i32
  }
  func.func @transform_7(%arg0: i32) -> (i32, i32) {
    %c0_i32 = arith.constant 0 : i32
    %c0_i32_0 = arith.constant 0 : i32
    return %c0_i32, %arg0 : i32, i32
  }
}

</mosaic_0001>

<bundles_post_ra>
// kernel: tpu_custom_call.1
= control target key start
LH: loop header
LB: loop body
LE: loop exit
PB: predicated region body
PF: predicated region fallthrough
CT: control target
= control target key end

     0   :  { %s1566_s0 = inlined_call_operand.hbm [shape: f32[5,1024], index: 0, kind: input, shape index: {}]   ;;  %s1567_s1 = inlined_call_operand.vmem [shape: f32[10,5], index: 1, kind: input, shape index: {}]   ;;  %s1568_s2 = inlined_call_operand.vmem [shape: f32[10,1], index: 2, kind: input, shape index: {}]   ;;  %s1569_s3 = inlined_call_operand.vmem [shape: f32[10,10], index: 3, kind: input, shape index: {}]   ;;  %s1570_s4 = inlined_call_operand.vmem [shape: f32[10,1], index: 4, kind: input, shape index: {}]   ;;  %s1571_s5 = inlined_call_operand.vmem [shape: f32[1,10], index: 5, kind: input, shape index: {}]   ;;  %s1572_s6 = inlined_call_operand.<no memory space> [shape: f32[1,1], index: 6, kind: input, shape index: {}]   ;;  %s1573_s7 = inlined_call_operand.hbm [shape: f32[1,1024], index: 7, kind: output, shape index: {}]  }
   0x1   :  { %v12_v0 = vstv %s1572_s6 }
   0x2   :  { %13 = vst [vmem:[#allocation2] sm:$0x1] %v12_v0 }
   0x3   :  { %14 = vsyncpa [#allocation4], 0 }
   0x4   :  { %15 = vsyncpa [#allocation5], 0  ;;  %s1381_s26 = smov [#allocation3]   ;;  %s1333_s30 = scalar_lea.hbm %s1566_s0, 1024 }
   0x5   :  { %s22_s27 = sshll.u32 %s1381_s26, 4  ;;  %p1334_p0 = scmp.ne.s32.totalorder %s1566_s0, %s1333_s30  ;;  %s23_s27 = int_to_ptr.vmem [resolvable:$true] %s22_s27 }
   0x6   :  { %p1337_p1 = scmp.lt.u32.totalorder %s1333_s30, %s1566_s0 }
   0x8   :  { %p1339_p2 = pnand %p1337_p1, %p1334_p0 }
   0xa   :  { %1342 = shalt.err (!%p1339_p2)
}
   0xb   :  { %s1343_s6 = scalar_lea.vmem %s23_s27, 1024  ;;  %p1348_p4 = scmp.lt.s32.totalorder %s23_s27, %s23_s27 }
   0xc   :  { %p1344_p3 = scmp.ne.s32.totalorder %s23_s27, %s1343_s6  ;;  %p1349_p5 = scmp.lt.s32.totalorder %s1343_s6, %s1343_s6 }
   0xe   :  { %p1350_p6 = por %p1349_p5, %p1348_p4 }
  0x10   :  { %p1351_p7 = pnand %p1350_p6, %p1344_p3 }
  0x12   :  { %1354 = shalt.err (!%p1351_p7)
}
  0x13   :  { %25 = dma.hbm_to_vmem [thread:$0]  %s1566_s0, 1024, %s23_s27, [#allocation4]  }
  0x14   :  { %1377 = dma.done.wait [#allocation4], 1024  }
  0x15   :  { %1378 = vsyncadd [#allocation4], 4294966272  ;;  %v1382_v1 = vmov 0.0   ;;  %v1383_v2 = vmov 0   ;;  %vm70_vm0 = vcmask 1044480   ;;  %vm63_vm1 = vcmask 39936  }
  0x16   :  { %159 = vmatprep.mubr.f32.mxu0 %v1382_v1  ;;  %236 = vmatprep.mubr.f32.mxu1 %v1382_v1  ;;  %v42_v3 = vld [vmem:[#allocation3 + $0x8] sm:$0x1f]  ;;  %v44_v4 = vld [vmem:[#allocation3 + $0x18] sm:$0x1f]  ;;  %v41_v5 = vld [vmem:[#allocation3] sm:$0x1f] }
  0x17   :  { %1315 = vset.pattern.permute.xlu0 %v1383_v2  ;;  %1316 = vset.pattern.permute.xlu1 %v1383_v2  ;;  %v43_v6 = vld [vmem:[#allocation3 + $0x10] sm:$0x1f]  ;;  %v49_v7 = vld [vmem:[%s1567_s1] sm:$0xff]  ;;  %v46_v8 = vld [vmem:[#allocation3 + $0x28] sm:$0x1f]  ;;  %vm440_vm2 = vcmask 1041408  }
  0x18   :  { %1217 = vmatprep.subr.msk.mxu0 %vm70_vm0, %v42_v3  ;;  %1221 = vmatprep.subr.msk.mxu1 %vm70_vm0, %v44_v4  ;;  %v48_v9 = vld [vmem:[#allocation3 + $0x38] sm:$0x1f]  ;;  %v45_v10 = vld [vmem:[#allocation3 + $0x20] sm:$0x1f]  ;;  %v47_v11 = vld [vmem:[#allocation3 + $0x30] sm:$0x1f] }
  0x19   :  { %1218 = vmatpush1.msk.msra.mxu0 %vm70_vm0, %v41_v5  ;;  %1222 = vmatpush1.msk.msra.mxu1 %vm70_vm0, %v43_v6  ;;  %v50_v12 = vld [vmem:[%s1567_s1 + $0x8] sm:$0x3]  ;;  %v51_v13 = vld [vmem:[%s1568_s2] sm:$0xff]  ;;  %vm1384_vm3 = vmmov 1   ;;  %vm433_vm5 = vcmask 80896  }
  0x1a   :  { %1219 = vmatmul.mubr.msk.f32.vlgmr.msra.gmra.mrb[0].mxu0 %vm63_vm1, %v49_v7  ;;  %1223 = vmatmul.mubr.msk.f32.vlgmr.msra.gmra.mrb[0].mxu1 %vm63_vm1, %v49_v7  ;;  %v52_v14 = vld [vmem:[%s1568_s2 + $0x8] sm:$0x3]  ;;  %v790_v15 = vld [vmem:[#allocation2] sm:$0x1]  ;;  %vm1487_vm4 = vmpackc.low %vm440_vm2, %vm1384_vm3 }
  0x1b   :  { %165 = vmatprep.mubr.f32.mxu0 %v1382_v1  ;;  %242 = vmatprep.mubr.f32.mxu1 %v1382_v1  ;;  %v421_v16 = vld [vmem:[%s1570_s4] sm:$0xff]  ;;  %v422_v17 = vld [vmem:[%s1570_s4 + $0x8] sm:$0x3] }
  0x1c   :  { %1225 = vmatprep.subr.msk.mxu0 %vm70_vm0, %v46_v8  ;;  %1229 = vmatprep.subr.msk.mxu1 %vm70_vm0, %v48_v9  ;;  %v419_v63 = vld [vmem:[%s1569_s3] sm:$0xff] }
  0x1d   :  { %1226 = vmatpush1.msk.msra.mxu0 %vm70_vm0, %v45_v10  ;;  %1230 = vmatpush1.msk.msra.mxu1 %vm70_vm0, %v47_v11 }
  0x1e   :  { %1220 = vmatmul.mubr.msk.f32.gmra.mrb[2].mxu0 %vm63_vm1, %v50_v12  ;;  %1224 = vmatmul.mubr.msk.f32.gmra.mrb[2].mxu1 %vm63_vm1, %v50_v12 }
  0x1f   :  { %313 = vmatprep.mubr.f32.mxu0 %v1382_v1  ;;  %390 = vmatprep.mubr.f32.mxu1 %v1382_v1 }
  0x20   :  { %55 = vperm.xlu0 %1315, %v51_v13   ;;  %425 = vperm.xlu1 %1316, %v421_v16   ;;  %v420_v13 = vld [vmem:[%s1569_s3 + $0x8] sm:$0x3] }
  0x22   :  { %1227 = vmatmul.mubr.msk.f32.vlgmr.msra.gmra.mrb[4].mxu0 %vm63_vm1, %v49_v7  ;;  %1231 = vmatmul.mubr.msk.f32.vlgmr.msra.gmra.mrb[4].mxu1 %vm63_vm1, %v49_v7 }
  0x23   :  { %319 = vmatprep.mubr.f32.mxu0 %v1382_v1  ;;  %396 = vmatprep.mubr.f32.mxu1 %v1382_v1 }
  0x24   :  { %60 = vperm.xlu0 %1315, %v52_v14   ;;  %430 = vperm.xlu1 %1316, %v422_v17  }
  0x26   :  { %1228 = vmatmul.mubr.msk.f32.gmra.mrb[6].mxu0 %vm63_vm1, %v50_v12  ;;  %1232 = vmatmul.mubr.msk.f32.gmra.mrb[6].mxu1 %vm63_vm1, %v50_v12 }
  0x27   :  { %529 = vmatprep.mubr.f32.mxu0 %v1382_v1  ;;  %606 = vmatprep.mubr.f32.mxu1 %v1382_v1 }
  0x28   :  { %793 = vperm.xlu0 %1315, %v790_v15  }
  0x9f   :  { %v56_v18 = vpop.permute.xlu0 %55  ;;  %v426_v16 = vpop.permute.xlu1 %425 }
  0xa3   :  { %v61_v23 = vpop.permute.xlu0 %60 }
  0xed   :  { %v161_v19 = vpop.f32.mrb[0].mxu0  ;;  %v238_v20 = vpop.f32.mrb[0].mxu1 }
  0xee   :  { %v163_v21 = vpop.f32.mrb[1].mxu0  ;;  %v240_v22 = vpop.f32.mrb[1].mxu1  ;;  %v162_v24 = vadd.f32 %v161_v19, %v56_v18  ;;  %v239_v25 = vadd.f32 %v238_v20, %v56_v18 }
  0xef   :  { %v164_v26 = vadd.f32 %v163_v21, %v56_v18  ;;  %v241_v27 = vadd.f32 %v240_v22, %v56_v18  ;;  %v431_v21 = vpop.permute.xlu1 %430 }
  0xf0   :  { %v403_v36 = vmax.f32 %v162_v24, 0.0  ;;  %v405_v37 = vmax.f32 %v239_v25, 0.0 }
  0xf1   :  { %v167_v28 = vpop.f32.mrb[2].mxu0  ;;  %v244_v29 = vpop.f32.mrb[2].mxu1  ;;  %v404_v40 = vmax.f32 %v164_v26, 0.0  ;;  %v406_v41 = vmax.f32 %v241_v27, 0.0 }
  0xf2   :  { %v168_v30 = vadd.f32 %v167_v28, %v61_v23  ;;  %v245_v31 = vadd.f32 %v244_v29, %v61_v23  ;;  %v169_v32 = vpop.f32.mrb[3].mxu0  ;;  %v246_v33 = vpop.f32.mrb[3].mxu1 }
  0xf3   :  { %v170_v34 = vadd.f32 %v169_v32, %v61_v23  ;;  %v247_v35 = vadd.f32 %v246_v33, %v61_v23 }
  0xf4   :  { %v411_v38 = vmax.f32 %v168_v30, 0.0  ;;  %v413_v39 = vmax.f32 %v245_v31, 0.0 }
  0xf5   :  { %v412_v42 = vmax.f32 %v170_v34, 0.0  ;;  %v414_v43 = vmax.f32 %v247_v35, 0.0  ;;  %v315_v44 = vpop.f32.mrb[4].mxu0  ;;  %v392_v45 = vpop.f32.mrb[4].mxu1 }
  0xf6   :  { %v1264_v46 = vpack.c.bf16 %v411_v38, %v403_v36  ;;  %v1270_v47 = vpack.c.bf16 %v413_v39, %v405_v37  ;;  %v317_v48 = vpop.f32.mrb[5].mxu0  ;;  %v394_v49 = vpop.f32.mrb[5].mxu1  ;;  %v316_v53 = vadd.f32 %v315_v44, %v56_v18  ;;  %v393_v54 = vadd.f32 %v392_v45, %v56_v18 }
  0xf7   :  { %v1261_v51 = vpack.c.bf16 %v412_v42, %v404_v40  ;;  %v1267_v52 = vpack.c.bf16 %v414_v43, %v406_v41  ;;  %v318_v55 = vadd.f32 %v317_v48, %v56_v18  ;;  %v395_v56 = vadd.f32 %v394_v49, %v56_v18 }
  0xf8   :  { %v407_v3 = vmax.f32 %v316_v53, 0.0  ;;  %v409_v4 = vmax.f32 %v393_v54, 0.0 }
  0xf9   :  { %v321_v57 = vpop.f32.mrb[6].mxu0  ;;  %v398_v58 = vpop.f32.mrb[6].mxu1  ;;  %1263 = vmatprep.subr.msk.bf16.mxu0 %vm1487_vm4, %v1261_v51  ;;  %1269 = vmatprep.subr.msk.bf16.mxu1 %vm1487_vm4, %v1267_v52  ;;  %v408_v7 = vmax.f32 %v318_v55, 0.0  ;;  %v410_v8 = vmax.f32 %v395_v56, 0.0 }
  0xfa   :  { %v322_v59 = vadd.f32 %v321_v57, %v61_v23  ;;  %v399_v60 = vadd.f32 %v398_v58, %v61_v23  ;;  %v323_v61 = vpop.f32.mrb[7].mxu0  ;;  %v400_v62 = vpop.f32.mrb[7].mxu1  ;;  %1266 = vmatpush1.bf16.msk.msra.mxu0 %vm1487_vm4, %v1264_v46  ;;  %1272 = vmatpush1.bf16.msk.msra.mxu1 %vm1487_vm4, %v1270_v47  ;;  %v789_v57 = vld [vmem:[%s1571_s5] sm:$0x1]  ;;  %s1386_s5 = smov [#allocation6]  }
  0xfb   :  { %v324_v0 = vadd.f32 %v323_v61, %v61_v23  ;;  %v401_v2 = vadd.f32 %v400_v62, %v61_v23  ;;  %s1208_s27 = sshll.u32 %s1386_s5, 4  ;;  %s1209_s27 = int_to_ptr.vmem [resolvable:$true] %s1208_s27 }
  0xfc   :  { %v415_v5 = vmax.f32 %v322_v59, 0.0  ;;  %v417_v6 = vmax.f32 %v399_v60, 0.0  ;;  %s1355_s28 = scalar_lea.vmem %s1209_s27, 128  ;;  %p1360_p9 = scmp.lt.s32.totalorder %s1209_s27, %s1209_s27 }
  0xfd   :  { %v416_v9 = vmax.f32 %v324_v0, 0.0  ;;  %v418_v10 = vmax.f32 %v401_v2, 0.0  ;;  %1235 = vmatmul.mubr.msk.f32.vlgmr.msra.gmra.mrb[8].mxu0 %vm433_vm5, %v419_v63  ;;  %1239 = vmatmul.mubr.msk.f32.vlgmr.msra.gmra.mrb[8].mxu1 %vm433_vm5, %v419_v63  ;;  %p1356_p8 = scmp.ne.s32.totalorder %s1209_s27, %s1355_s28  ;;  %p1361_p10 = scmp.lt.s32.totalorder %s1355_s28, %s1355_s28 }
  0xfe   :  { %v1276_v11 = vpack.c.bf16 %v415_v5, %v407_v3  ;;  %v1282_v12 = vpack.c.bf16 %v417_v6, %v409_v4  ;;  %535 = vmatprep.mubr.f32.mxu0 %v1382_v1  ;;  %612 = vmatprep.mubr.f32.mxu1 %v1382_v1 }
  0xff   :  { %v1273_v14 = vpack.c.bf16 %v416_v9, %v408_v7  ;;  %v1279_v15 = vpack.c.bf16 %v418_v10, %v410_v8  ;;  %p1362_p11 = por %p1361_p10, %p1360_p9 }
 0x101   :  { %1236 = vmatmul.mubr.msk.f32.gmra.mrb[10].mxu0 %vm433_vm5, %v420_v13  ;;  %1240 = vmatmul.mubr.msk.f32.gmra.mrb[10].mxu1 %vm433_vm5, %v420_v13  ;;  %p1363_p12 = pnand %p1362_p11, %p1356_p8 }
 0x102   :  { %1275 = vmatprep.subr.msk.bf16.mxu0 %vm1487_vm4, %v1273_v14  ;;  %1281 = vmatprep.subr.msk.bf16.mxu1 %vm1487_vm4, %v1279_v15  ;;  %v794_v15 = vpop.permute.xlu0 %793 }
 0x103   :  { %1278 = vmatpush1.bf16.msk.msra.mxu0 %vm1487_vm4, %v1276_v11  ;;  %1284 = vmatpush1.bf16.msk.msra.mxu1 %vm1487_vm4, %v1282_v12 }
 0x104   :  { %683 = vmatprep.mubr.f32.mxu0 %v1382_v1  ;;  %760 = vmatprep.mubr.f32.mxu1 %v1382_v1 }
 0x106   :  { %1243 = vmatmul.mubr.msk.f32.vlgmr.msra.gmra.mrb[12].mxu0 %vm433_vm5, %v419_v63  ;;  %1247 = vmatmul.mubr.msk.f32.vlgmr.msra.gmra.mrb[12].mxu1 %vm433_vm5, %v419_v63 }
 0x107   :  { %689 = vmatprep.mubr.f32.mxu0 %v1382_v1  ;;  %766 = vmatprep.mubr.f32.mxu1 %v1382_v1 }
 0x10a   :  { %1244 = vmatmul.mubr.msk.f32.gmra.mrb[14].mxu0 %vm433_vm5, %v420_v13  ;;  %1248 = vmatmul.mubr.msk.f32.gmra.mrb[14].mxu1 %vm433_vm5, %v420_v13 }
 0x10b   :  { %891 = vmatprep.mubr.f32.mxu0 %v1382_v1  ;;  %962 = vmatprep.mubr.f32.mxu1 %v1382_v1 }
 0x1d0   :  { %v531_v17 = vpop.f32.mrb[8].mxu0  ;;  %v608_v18 = vpop.f32.mrb[8].mxu1 }
 0x1d1   :  { %v533_v19 = vpop.f32.mrb[9].mxu0  ;;  %v610_v20 = vpop.f32.mrb[9].mxu1  ;;  %v532_v22 = vadd.f32 %v531_v17, %v426_v16  ;;  %v609_v23 = vadd.f32 %v608_v18, %v426_v16 }
 0x1d2   :  { %v534_v24 = vadd.f32 %v533_v19, %v426_v16  ;;  %v611_v25 = vadd.f32 %v610_v20, %v426_v16 }
 0x1d3   :  { %v773_v34 = vmax.f32 %v532_v22, 0.0  ;;  %v775_v35 = vmax.f32 %v609_v23, 0.0 }
 0x1d4   :  { %v537_v26 = vpop.f32.mrb[10].mxu0  ;;  %v614_v27 = vpop.f32.mrb[10].mxu1  ;;  %v774_v38 = vmax.f32 %v534_v24, 0.0  ;;  %v776_v39 = vmax.f32 %v611_v25, 0.0 }
 0x1d5   :  { %v538_v28 = vadd.f32 %v537_v26, %v431_v21  ;;  %v615_v29 = vadd.f32 %v614_v27, %v431_v21  ;;  %v539_v30 = vpop.f32.mrb[11].mxu0  ;;  %v616_v31 = vpop.f32.mrb[11].mxu1 }
 0x1d6   :  { %v540_v32 = vadd.f32 %v539_v30, %v431_v21  ;;  %v617_v33 = vadd.f32 %v616_v31, %v431_v21 }
 0x1d7   :  { %v781_v36 = vmax.f32 %v538_v28, 0.0  ;;  %v783_v37 = vmax.f32 %v615_v29, 0.0 }
 0x1d8   :  { %v782_v40 = vmax.f32 %v540_v32, 0.0  ;;  %v784_v41 = vmax.f32 %v617_v33, 0.0 }
 0x1d9   :  { %v1288_v42 = vpack.c.bf16 %v781_v36, %v773_v34  ;;  %v1294_v43 = vpack.c.bf16 %v783_v37, %v775_v35  ;;  %v685_v44 = vpop.f32.mrb[12].mxu0  ;;  %v762_v45 = vpop.f32.mrb[12].mxu1  ;;  %v1385_v36 = vmov 1966171168  }
 0x1da   :  { %v1285_v46 = vpack.c.bf16 %v782_v40, %v774_v38  ;;  %v1291_v47 = vpack.c.bf16 %v784_v41, %v776_v39  ;;  %v687_v48 = vpop.f32.mrb[13].mxu0  ;;  %v764_v49 = vpop.f32.mrb[13].mxu1  ;;  %v686_v51 = vadd.f32 %v685_v44, %v426_v16  ;;  %v763_v52 = vadd.f32 %v762_v45, %v426_v16 }
 0x1db   :  { %v688_v53 = vadd.f32 %v687_v48, %v426_v16  ;;  %v765_v54 = vadd.f32 %v764_v49, %v426_v16  ;;  %v1156_v37 = vunpack.c.l.s4 %v1385_v36 }
 0x1dc   :  { %1287 = vmatprep.subr.msk.bf16.mxu0 %vm1487_vm4, %v1285_v46  ;;  %1293 = vmatprep.subr.msk.bf16.mxu1 %vm1487_vm4, %v1291_v47  ;;  %v777_v0 = vmax.f32 %v686_v51, 0.0  ;;  %v779_v2 = vmax.f32 %v763_v52, 0.0 }
 0x1dd   :  { %v691_v55 = vpop.f32.mrb[14].mxu0  ;;  %v768_v56 = vpop.f32.mrb[14].mxu1  ;;  %1290 = vmatpush1.bf16.msk.msra.mxu0 %vm1487_vm4, %v1288_v42  ;;  %1296 = vmatpush1.bf16.msk.msra.mxu1 %vm1487_vm4, %v1294_v43  ;;  %v778_v5 = vmax.f32 %v688_v53, 0.0  ;;  %v780_v6 = vmax.f32 %v765_v54, 0.0  ;;  %v1157_v44 = vunpack.c.0.s8 %v1156_v37 }
 0x1de   :  { %v692_v58 = vadd.f32 %v691_v55, %v431_v21  ;;  %v769_v59 = vadd.f32 %v768_v56, %v431_v21  ;;  %v693_v60 = vpop.f32.mrb[15].mxu0  ;;  %v770_v61 = vpop.f32.mrb[15].mxu1 }
 0x1df   :  { %v694_v62 = vadd.f32 %v693_v60, %v431_v21  ;;  %v771_v63 = vadd.f32 %v770_v61, %v431_v21 }
 0x1e0   :  { %v785_v3 = vmax.f32 %v692_v58, 0.0  ;;  %v787_v4 = vmax.f32 %v769_v59, 0.0  ;;  %1251 = vmatmul.mubr.msk.f32.vlgmr.msra.gmra.mrb[16].mxu0 %vm433_vm5, %v789_v57  ;;  %1254 = vmatmul.mubr.msk.f32.vlgmr.msra.gmra.mrb[16].mxu1 %vm433_vm5, %v789_v57 }
 0x1e1   :  { %v786_v7 = vmax.f32 %v694_v62, 0.0  ;;  %v788_v8 = vmax.f32 %v771_v63, 0.0  ;;  %1033 = vmatprep.mubr.f32.mxu0 %v1382_v1  ;;  %1104 = vmatprep.mubr.f32.mxu1 %v1382_v1  ;;  %v796_v1 = vlaneseq }
 0x1e2   :  { %v1300_v9 = vpack.c.bf16 %v785_v3, %v777_v0  ;;  %v1306_v10 = vpack.c.bf16 %v787_v4, %v779_v2 }
 0x1e3   :  { %v1297_v11 = vpack.c.bf16 %v786_v7, %v778_v5  ;;  %v1303_v12 = vpack.c.bf16 %v788_v8, %v780_v6  ;;  %v797_v13 = vshrl.u32 %v796_v1, 7 }
 0x1e5   :  { %1299 = vmatprep.subr.msk.bf16.mxu0 %vm1487_vm4, %v1297_v11  ;;  %1305 = vmatprep.subr.msk.bf16.mxu1 %vm1487_vm4, %v1303_v12  ;;  %v798_v14 = vsub.s32 0, %v797_v13  ;;  %v1160_v54 = vsub.s32 %v1157_v44, %v797_v13 }
 0x1e6   :  { %1302 = vmatpush1.bf16.msk.msra.mxu0 %vm1487_vm4, %v1300_v9  ;;  %1308 = vmatpush1.bf16.msk.msra.mxu1 %vm1487_vm4, %v1306_v10 }
 0x1e7   :  { %v799_v16 = vrot.slane %v794_v15, %v798_v14 }
 0x1e9   :  { %1257 = vmatmul.mubr.msk.f32.vlgmr.msra.gmra.mrb[18].mxu0 %vm433_vm5, %v789_v57  ;;  %1260 = vmatmul.mubr.msk.f32.vlgmr.msra.gmra.mrb[18].mxu1 %vm433_vm5, %v789_v57 }
 0x2b3   :  { %v893_v17 = vpop.f32.mrb[16].mxu0  ;;  %v964_v18 = vpop.f32.mrb[16].mxu1 }
 0x2b4   :  { %v894_v19 = vadd.f32 %v893_v17, %v799_v16  ;;  %v965_v20 = vadd.f32 %v964_v18, %v799_v16  ;;  %v895_v21 = vpop.f32.mrb[17].mxu0  ;;  %v966_v22 = vpop.f32.mrb[17].mxu1 }
 0x2b5   :  { %v896_v23 = vadd.f32 %v895_v21, %v799_v16  ;;  %v967_v24 = vadd.f32 %v966_v22, %v799_v16 }
 0x2b6   :  { %v1111_v25 = vmul.f32 0.5, %v894_v19  ;;  %v1113_v50 = vmul.f32 0.5, %v965_v20 }
 0x2b7   :  { %v1112_v26 = vmul.f32 0.5, %v896_v23  ;;  %v1114_v27 = vmul.f32 0.5, %v967_v24 }
 0x2b8   :  { %1317 = vtanh.f32 %v1111_v25 }
 0x2b9   :  { %1319 = vtanh.f32 %v1113_v50 }
 0x2ba   :  { %1321 = vtanh.f32 %v1112_v26 }
 0x2bb   :  { %1323 = vtanh.f32 %v1114_v27 }
 0x2bc   :  { %v1035_v28 = vpop.f32.mrb[18].mxu0  ;;  %v1106_v29 = vpop.f32.mrb[18].mxu1 }
 0x2bd   :  { %v1036_v30 = vadd.f32 %v1035_v28, %v799_v16  ;;  %v1107_v31 = vadd.f32 %v1106_v29, %v799_v16  ;;  %v1037_v32 = vpop.f32.mrb[19].mxu0  ;;  %v1108_v33 = vpop.f32.mrb[19].mxu1 }
 0x2be   :  { %v1038_v34 = vadd.f32 %v1037_v32, %v799_v16  ;;  %v1109_v35 = vadd.f32 %v1108_v33, %v799_v16 }
 0x2bf   :  { %v1115_v38 = vmul.f32 0.5, %v1036_v30  ;;  %v1117_v39 = vmul.f32 0.5, %v1107_v31 }
 0x2c0   :  { %v1116_v40 = vmul.f32 0.5, %v1038_v34  ;;  %v1118_v41 = vmul.f32 0.5, %v1109_v35 }
 0x2c1   :  { %1325 = vtanh.f32 %v1115_v38 }
 0x2c2   :  { %v1318_v42 = vpop.eup %1317  ;;  %1327 = vtanh.f32 %v1117_v39 }
 0x2c3   :  { %v1320_v43 = vpop.eup %1319  ;;  %v1127_v45 = vadd.f32 1.0, %v1318_v42  ;;  %1329 = vtanh.f32 %v1116_v40 }
 0x2c4   :  { %v1322_v46 = vpop.eup %1321  ;;  %v1129_v47 = vadd.f32 1.0, %v1320_v43  ;;  %1331 = vtanh.f32 %v1118_v41 }
 0x2c5   :  { %v1324_v48 = vpop.eup %1323  ;;  %v1135_v49 = vmul.f32 0.5, %v1127_v45  ;;  %v1128_v51 = vadd.f32 1.0, %v1322_v46 }
 0x2c6   :  { %v1137_v52 = vmul.f32 0.5, %v1129_v47  ;;  %v1130_v53 = vadd.f32 1.0, %v1324_v48 }
 0x2c7   :  { %v1136_v55 = vmul.f32 0.5, %v1128_v51 }
 0x2c8   :  { %v1138_v56 = vmul.f32 0.5, %v1130_v53 }
 0x2c9   :  { %v1151_v57 = vcombine.low %v1135_v49, %v1136_v55 }
 0x2ca   :  { %v1152_v58 = vcombine.low %v1137_v52, %v1138_v56 }
 0x2cb   :  { %v1326_v59 = vpop.eup %1325  ;;  %v1161_v60 = vrot.slane %v1151_v57, %v1160_v54 }
 0x2cc   :  { %v1328_v61 = vpop.eup %1327  ;;  %v1168_v62 = vrot.slane %v1152_v58, %v1160_v54  ;;  %v1131_v63 = vadd.f32 1.0, %v1326_v59 }
 0x2cd   :  { %v1330_v0 = vpop.eup %1329  ;;  %v1133_v2 = vadd.f32 1.0, %v1328_v61 }
 0x2ce   :  { %v1332_v3 = vpop.eup %1331  ;;  %v1139_v4 = vmul.f32 0.5, %v1131_v63  ;;  %v1132_v5 = vadd.f32 1.0, %v1330_v0  ;;  %v1183_v6 = vcombine.low %v1161_v60, %v1168_v62 }
 0x2cf   :  { %v1141_v7 = vmul.f32 0.5, %v1133_v2  ;;  %v1134_v8 = vadd.f32 1.0, %v1332_v3 }
 0x2d0   :  { %v1140_v9 = vmul.f32 0.5, %v1132_v5  ;;  %v1191_v15 = vrot.slane %v1183_v6, %v1160_v54 }
 0x2d1   :  { %v1142_v10 = vmul.f32 0.5, %v1134_v8 }
 0x2d2   :  { %v1153_v11 = vcombine.low %v1139_v4, %v1140_v9 }
 0x2d3   :  { %v1154_v12 = vcombine.low %v1141_v7, %v1142_v10 }
 0x2d4   :  { %v1175_v1 = vrot.slane %v1153_v11, %v1160_v54 }
 0x2d5   :  { %v1182_v13 = vrot.slane %v1154_v12, %v1160_v54 }
 0x2d7   :  { %v1184_v14 = vcombine.low %v1175_v1, %v1182_v13 }
 0x2d9   :  { %v1198_v16 = vrot.slane %v1184_v14, %v1160_v54 }
 0x2db   :  { %v1199_v17 = vcombine.low %v1191_v15, %v1198_v16 }
 0x2dd   :  { %1201 = vst [vmem:[#allocation6] sm:$0xff] %v1199_v17 }
 0x2de   :  { %1366 = shalt.err (!%p1363_p12)
}
 0x2df   :  { %s1367_s8 = scalar_lea.hbm %s1573_s7, 128 }
 0x2e0   :  { %p1368_p13 = scmp.ne.s32.totalorder %s1573_s7, %s1367_s8  ;;  %p1371_p0 = scmp.lt.u32.totalorder %s1367_s8, %s1573_s7 }
 0x2e2   :  { %p1373_p1 = pnand %p1371_p0, %p1368_p13 }
 0x2e4   :  { %1376 = shalt.err (!%p1373_p1)
}
 0x2e5   :  { %1211 = dma.vmem_to_hbm [thread:$0]  %s1209_s27, 128, %s1573_s7, [#allocation5]  }
 0x2e6   :  { %1379 = dma.done.wait [#allocation5], 128  }
 0x2e7   :  { %1380 = vsyncadd [#allocation5], 4294967168 }
 0x2e8   :  { %1215 = vsyncpa [#allocation4], 1 }
 0x2e9   :  { %1216 = vsyncpa [#allocation5], 1 }

</bundles_post_ra>
